<compile_context>
chip_gen: v7x
topology: tpu7x:2x2x1
jax: 0.10.0
libtpu: 0.0.40
codegen_flags: <defaults>
</compile_context>

<pallas_src>
import functools

import jax
import jax.numpy as jnp
from jax import lax
from jax.experimental import pallas as pl
from jax.experimental.pallas import tpu as pltpu

LANE = 128
SUBLANE = 8


def _chip_config():
    """(num TensorCore slices to shard over, default block_rows)."""
    try:
        kind = jax.devices()[0].device_kind.lower()
    except Exception:
        kind = ""
    if "v7" in kind or "7x" in kind:
        # v7x: 2 TensorCores/chip; bigger tiles to amortize the ~0.35us
        # per-grid-step overhead against ~3.2 TB/s HBM (2 MiB/input/buffer
        # f32 still fits easily in the 32 MiB scoped default).
        return 2, 2048
    # v5e / v6e: 1 TensorCore; 1024-row tiles already sit near the HBM
    # roofline and stay well inside the 16/32 MiB scoped-VMEM defaults.
    return 1, 1024


def _stable_bce(x, y):
    # Numerically stable BCE-with-logits (same formula PyTorch uses).
    return jnp.maximum(x, jnp.float32(0.0)) - x * y + jnp.log1p(jnp.exp(-jnp.abs(x)))


def _pick_chunk_rows(block_rows, target=64):
    """Largest divisor of block_rows that is a multiple of 8 and <= target."""
    best = SUBLANE
    d = SUBLANE
    while d <= target:
        if block_rows % d == 0:
            best = d
        d += SUBLANE
    return best


def _bce_kernel(pred_ref, tgt_ref, sum_ref, cnt_ref, *,
                ignore_index, block_rows, chunk_rows, tiles_per_core,
                nblocks, guard_dup):
    c = pl.program_id(0)   # TensorCore slice (size 1 on 1-TC chips)
    j = pl.program_id(1)   # reduction step within the slice

    @pl.when(j == 0)
    def _():
        sum_ref[...] = jnp.zeros_like(sum_ref)
        cnt_ref[...] = jnp.zeros_like(cnt_ref)

    def accumulate_chunk(r0):
        # (chunk_rows, 128) slice: intermediates stay vreg-sized, so the
        # VMEM vld/vst slots are not flooded by multi-MiB f32 temporaries.
        x = pred_ref[pl.ds(r0, chunk_rows), :].astype(jnp.float32)
        t = tgt_ref[pl.ds(r0, chunk_rows), :].astype(jnp.float32)
        valid = t != jnp.float32(ignore_index)
        y = jnp.where(valid, t, jnp.float32(0.0))
        loss = jnp.where(valid, _stable_bce(x, y), jnp.float32(0.0))
        # (chunk,128) -> (chunk/8, 8, 128); sum over axis 0 is a chain of
        # full-vreg VPU adds into the resident (8,128) accumulators.
        sum_ref[...] += loss.reshape(-1, SUBLANE, LANE).sum(axis=0)
        cnt_ref[...] += valid.astype(jnp.float32).reshape(-1, SUBLANE, LANE).sum(axis=0)

    def accumulate_block():
        nchunks = block_rows // chunk_rows
        if nchunks == 1:
            accumulate_chunk(0)
        else:
            def body(i, carry):
                accumulate_chunk(pl.multiple_of(i * chunk_rows, chunk_rows))
                return carry
            lax.fori_loop(0, nchunks, body, 0, unroll=False)

    if guard_dup:
        # Grid over-covers the block range (2-core split, odd nblocks): skip
        # the clamped duplicate blocks with a scalar guard instead of a
        # per-element bounds mask.
        block_id = c * tiles_per_core + j
        pl.when(block_id < nblocks)(accumulate_block)
    else:
        accumulate_block()


def _run_reduce_kernel(pred2, tgt2, *, ignore_index, block_rows, num_cores):
    rows = pred2.shape[0]
    nblocks = rows // block_rows           # exact: wrapper guarantees it
    num_cores = max(1, min(num_cores, nblocks))
    tiles_per_core = pl.cdiv(nblocks, num_cores)
    guard_dup = num_cores * tiles_per_core > nblocks
    chunk_rows = _pick_chunk_rows(block_rows)

    kernel = functools.partial(
        _bce_kernel,
        ignore_index=ignore_index,
        block_rows=block_rows,
        chunk_rows=chunk_rows,
        tiles_per_core=tiles_per_core,
        nblocks=nblocks,
        guard_dup=guard_dup,
    )

    def in_map(c, j):
        # Clamp keeps the auto-DMA in bounds for the duplicate blocks of an
        # over-covering grid; those blocks are skipped inside the kernel.
        return (jnp.minimum(c * tiles_per_core + j, nblocks - 1), 0)

    n_elems = rows * LANE
    cost = pl.CostEstimate(
        flops=8 * n_elems,
        transcendentals=2 * n_elems,
        bytes_accessed=int(pred2.size * pred2.dtype.itemsize
                           + tgt2.size * tgt2.dtype.itemsize
                           + 2 * num_cores * SUBLANE * LANE * 4),
    )

    # TODO(synk): on v7x, confirm with xprof that the leading size-2 axis
    # actually shards across both TensorCores; if not, switch it to
    # pltpu.CORE_PARALLEL (or pl.core_map + create_tensorcore_mesh).
    cp_kwargs = dict(dimension_semantics=("parallel", "arbitrary"))
    in_bytes = 2 * block_rows * LANE * (pred2.dtype.itemsize + tgt2.dtype.itemsize)
    if in_bytes > 12 * 1024 * 1024:
        cp_kwargs["vmem_limit_bytes"] = min(in_bytes + (8 << 20), 48 << 20)

    sums, cnts = pl.pallas_call(
        kernel,
        out_shape=(
            jax.ShapeDtypeStruct((num_cores * SUBLANE, LANE), jnp.float32),
            jax.ShapeDtypeStruct((num_cores * SUBLANE, LANE), jnp.float32),
        ),
        grid_spec=pltpu.PrefetchScalarGridSpec(
            num_scalar_prefetch=0,
            grid=(num_cores, tiles_per_core),
            in_specs=[
                pl.BlockSpec((block_rows, LANE), in_map),
                pl.BlockSpec((block_rows, LANE), in_map),
            ],
            out_specs=[
                pl.BlockSpec((SUBLANE, LANE), lambda c, j: (c, 0)),
                pl.BlockSpec((SUBLANE, LANE), lambda c, j: (c, 0)),
            ],
        ),
        compiler_params=pltpu.CompilerParams(**cp_kwargs),
        cost_estimate=cost,
    )(pred2, tgt2)
    return jnp.sum(sums), jnp.sum(cnts)


def bce_with_logits_loss(pred, target, ignore_index=-1, block_rows=None,
                         num_cores=None):
    """Mean BCE-with-logits over elements where target != ignore_index.

    Matches vedaseg's BCEWithLogitsLoss.forward (mean over the valid
    selection; NaN when every element is ignored, as in PyTorch).
    """
    det_cores, det_br = _chip_config()
    if block_rows is None:
        block_rows = det_br
    if num_cores is None:
        num_cores = det_cores
    assert block_rows % SUBLANE == 0 and block_rows >= SUBLANE

    pred_f = pred.reshape(-1)      # native dtype; no wrapper upcast
    tgt_f = target.reshape(-1)
    n = pred_f.shape[0]

    # Aligned prefix handled by the kernel: complete 128-lane rows, rounded
    # down to a multiple of the row tile -> no in-kernel bounds mask and no
    # full-array pad copy are ever needed.
    rows_aligned = ((n // LANE) // SUBLANE) * SUBLANE
    if rows_aligned:
        br = min(block_rows, rows_aligned)
        rows = (rows_aligned // br) * br
    else:
        br = 0
        rows = 0
    n_main = rows * LANE

    total = jnp.float32(0.0)
    count = jnp.float32(0.0)

    if n_main:
        if n_main == n:
            pred_main, tgt_main = pred_f, tgt_f
        else:
            pred_main = pred_f[:n_main]
            tgt_main = tgt_f[:n_main]
        s, c = _run_reduce_kernel(
            pred_main.reshape(rows, LANE), tgt_main.reshape(rows, LANE),
            ignore_index=ignore_index, block_rows=br, num_cores=num_cores)
        total = total + s
        count = count + c

    if n_main < n:
        # Ragged tail: tiny jnp epilogue instead of a full-array pad copy.
        pt = pred_f[n_main:].astype(jnp.float32)
        tt = tgt_f[n_main:].astype(jnp.float32)
        valid = tt != jnp.float32(ignore_index)
        y = jnp.where(valid, tt, jnp.float32(0.0))
        total = total + jnp.sum(jnp.where(valid, _stable_bce(pt, y), jnp.float32(0.0)))
        count = count + jnp.sum(valid.astype(jnp.float32))

    # PyTorch semantics: mean over an empty (all-ignored) selection is NaN.
    return total / count


def _reference(pred, target, ignore_index=-1):
    pred = pred.reshape(-1).astype(jnp.float32)
    target = target.reshape(-1).astype(jnp.float32)
    valid = target != ignore_index
    y = jnp.where(valid, target, 0.0)
    l = jnp.maximum(pred, 0.0) - pred * y + jnp.log1p(jnp.exp(-jnp.abs(pred)))
    l = jnp.where(valid, l, 0.0)
    return jnp.sum(l) / jnp.sum(valid.astype(jnp.float32))


if __name__ == "__main__":
    key = jax.random.PRNGKey(0)
    keys = jax.random.split(key, 6)

    def make(shape, k, p_ignore=0.2):
        k1, k2, k3 = jax.random.split(k, 3)
        p = jax.random.normal(k1, shape, dtype=jnp.float32)
        t = jax.random.bernoulli(k2, 0.5, shape).astype(jnp.float32)
        ign = jax.random.bernoulli(k3, p_ignore, shape)
        return p, jnp.where(ign, jnp.float32(-1.0), t)

    def check(name, p, t, **kw):
        out = jax.block_until_ready(bce_with_logits_loss(p, t, ignore_index=-1, **kw))
        ref = _reference(p, t, ignore_index=-1)
        assert jnp.allclose(out, ref, rtol=1e-5, atol=1e-6), (name, out, ref)

    # 1) Aligned NCHW input (2*4*16*16 = 2048 elements), single block.
    p1, t1 = make((2, 4, 16, 16), keys[0])
    check("aligned", p1, t1)
    # 2) Multi-step reduction grid (block_rows=8 -> 2 blocks).
    check("multiblock", p1, t1, block_rows=8)
    # 3) Forced 2-core split with odd block count exercises the duplicate-
    #    block pl.when guard (runs as a serial size-2 axis on 1-TC chips).
    p3, t3 = make((2, 3, 4, 128), keys[1])
    check("dup-guard", p3, t3, block_rows=8, num_cores=2)
    # 4) Ragged element count: kernel on aligned prefix + jnp tail.
    p4, t4 = make((2, 3, 33, 17), keys[2])
    check("ragged", p4, t4, block_rows=8)
    # 5) Tiny input (< 1024 elements): pure jnp tail path.
    p5, t5 = make((2, 3, 7, 9), keys[3])
    check("tiny", p5, t5)
    # 6) In-kernel chunked fori_loop path (256-row block, four 64-row chunks).
    p6, t6 = make((2, 4, 64, 64), keys[4])
    check("chunked", p6, t6)

    print("KERNEL_OK")
</pallas_src>

<mosaic_0001>
module attributes {stable_mosaic.version = 11 : i64} {
  func.func @_bce_kernel(%arg0: i32, %arg1: i32, %arg2: memref<16x128xf32, #tpu.memory_space<vmem>>, %arg3: memref<16x128xf32, #tpu.memory_space<vmem>>, %arg4: memref<8x128xf32, #tpu.memory_space<vmem>>, %arg5: memref<8x128xf32, #tpu.memory_space<vmem>>) attributes {dimension_semantics = [#tpu.dimension_semantics<parallel>, #tpu.dimension_semantics<arbitrary>], iteration_bounds = array<i64: 1, 1>, scalar_prefetch = 0 : i64, scratch_operands = 0 : i64, tpu.core_type = #tpu.core_type<tc>, window_params = [{transform_indices = @transform_0, window_bounds = array<i64: 16, 128>}, {transform_indices = @transform_1, window_bounds = array<i64: 16, 128>}, {transform_indices = @transform_2, window_bounds = array<i64: 8, 128>}, {transform_indices = @transform_3, window_bounds = array<i64: 8, 128>}]} {
    %c0_i32 = arith.constant 0 : i32
    %0 = arith.cmpi eq, %arg1, %c0_i32 : i32
    %1 = arith.extui %0 : i1 to i32
    %c0_i32_0 = arith.constant 0 : i32
    %2 = arith.cmpi ne, %1, %c0_i32_0 : i32
    scf.if %2 {
      %cst_18 = arith.constant 0.000000e+00 : f32
      %33 = vector.broadcast %cst_18 : f32 to vector<8x128xf32>
      %c0_19 = arith.constant 0 : index
      %c0_20 = arith.constant 0 : index
      %34 = vector.load %arg4[%c0_19, %c0_20] : memref<8x128xf32, #tpu.memory_space<vmem>>, vector<8x128xf32>
      tpu.vector_store %arg4[%c0_19, %c0_20], %33 {strides = array<i32>} : memref<8x128xf32, #tpu.memory_space<vmem>>, vector<8x128xf32>,
      %cst_21 = arith.constant 0.000000e+00 : f32
      %35 = vector.broadcast %cst_21 : f32 to vector<8x128xf32>
      %c0_22 = arith.constant 0 : index
      %c0_23 = arith.constant 0 : index
      %36 = vector.load %arg5[%c0_22, %c0_23] : memref<8x128xf32, #tpu.memory_space<vmem>>, vector<8x128xf32>
      tpu.vector_store %arg5[%c0_22, %c0_23], %35 {strides = array<i32>} : memref<8x128xf32, #tpu.memory_space<vmem>>, vector<8x128xf32>,
    } else {
    }
    %c0 = arith.constant 0 : index
    %c0_1 = arith.constant 0 : index
    %3 = vector.load %arg2[%c0, %c0_1] : memref<16x128xf32, #tpu.memory_space<vmem>>, vector<16x128xf32>
    %c0_2 = arith.constant 0 : index
    %c0_3 = arith.constant 0 : index
    %4 = vector.load %arg3[%c0_2, %c0_3] : memref<16x128xf32, #tpu.memory_space<vmem>>, vector<16x128xf32>
    %cst = arith.constant -1.000000e+00 : f32
    %5 = vector.broadcast %cst : f32 to vector<16x128xf32>
    %6 = arith.cmpf one, %4, %5 : vector<16x128xf32>
    %cst_4 = arith.constant 0.000000e+00 : f32
    %7 = vector.broadcast %cst_4 : f32 to vector<16x128xf32>
    %8 = arith.select %6, %4, %7 : vector<16x128xi1>, vector<16x128xf32>
    %cst_5 = arith.constant 0.000000e+00 : f32
    %9 = vector.broadcast %cst_5 : f32 to vector<16x128xf32>
    %10 = arith.maximumf %3, %9 : vector<16x128xf32>
    %11 = arith.mulf %3, %8 : vector<16x128xf32>
    %12 = arith.subf %10, %11 : vector<16x128xf32>
    %13 = math.absf %3 : vector<16x128xf32>
    %cst_6 = arith.constant 0.000000e+00 : f32
    %14 = vector.broadcast %cst_6 : f32 to vector<16x128xf32>
    %15 = arith.subf %14, %13 : vector<16x128xf32>
    %16 = math.exp %15 : vector<16x128xf32>
    %17 = math.log1p %16 : vector<16x128xf32>
    %18 = arith.addf %12, %17 : vector<16x128xf32>
    %cst_7 = arith.constant 0.000000e+00 : f32
    %19 = vector.broadcast %cst_7 : f32 to vector<16x128xf32>
    %20 = arith.select %6, %18, %19 : vector<16x128xi1>, vector<16x128xf32>
    %c0_8 = arith.constant 0 : index
    %c0_9 = arith.constant 0 : index
    %21 = vector.load %arg4[%c0_8, %c0_9] : memref<8x128xf32, #tpu.memory_space<vmem>>, vector<8x128xf32>
    %22 = vector.shape_cast %20 : vector<16x128xf32> to vector<2x8x128xf32>
    %cst_10 = arith.constant dense<0.000000e+00> : vector<8x128xf32>
    %23 = vector.multi_reduction <add>, %22, %cst_10 [0] : vector<2x8x128xf32> to vector<8x128xf32>
    %24 = arith.addf %21, %23 : vector<8x128xf32>
    %c0_11 = arith.constant 0 : index
    %c0_12 = arith.constant 0 : index
    %25 = vector.load %arg4[%c0_11, %c0_12] : memref<8x128xf32, #tpu.memory_space<vmem>>, vector<8x128xf32>
    tpu.vector_store %arg4[%c0_11, %c0_12], %24 {strides = array<i32>} : memref<8x128xf32, #tpu.memory_space<vmem>>, vector<8x128xf32>,
    %c0_13 = arith.constant 0 : index
    %c0_14 = arith.constant 0 : index
    %26 = vector.load %arg5[%c0_13, %c0_14] : memref<8x128xf32, #tpu.memory_space<vmem>>, vector<8x128xf32>
    %27 = arith.extui %6 : vector<16x128xi1> to vector<16x128xi32>
    %28 = arith.sitofp %27 : vector<16x128xi32> to vector<16x128xf32>
    %29 = vector.shape_cast %28 : vector<16x128xf32> to vector<2x8x128xf32>
    %cst_15 = arith.constant dense<0.000000e+00> : vector<8x128xf32>
    %30 = vector.multi_reduction <add>, %29, %cst_15 [0] : vector<2x8x128xf32> to vector<8x128xf32>
    %31 = arith.addf %26, %30 : vector<8x128xf32>
    %c0_16 = arith.constant 0 : index
    %c0_17 = arith.constant 0 : index
    %32 = vector.load %arg5[%c0_16, %c0_17] : memref<8x128xf32, #tpu.memory_space<vmem>>, vector<8x128xf32>
    tpu.vector_store %arg5[%c0_16, %c0_17], %31 {strides = array<i32>} : memref<8x128xf32, #tpu.memory_space<vmem>>, vector<8x128xf32>,
    return
  }
  func.func @transform_0(%arg0: i32, %arg1: i32) -> (i32, i32) {
    %c1_i32 = arith.constant 1 : i32
    %0 = arith.muli %arg0, %c1_i32 : i32
    %1 = arith.addi %0, %arg1 : i32
    %c0_i32 = arith.constant 0 : i32
    %2 = arith.minsi %1, %c0_i32 : i32
    %c0_i32_0 = arith.constant 0 : i32
    %c0_i32_1 = arith.constant 0 : i32
    return %2, %c0_i32_0 : i32, i32
  }
  func.func @transform_1(%arg0: i32, %arg1: i32) -> (i32, i32) {
    %c1_i32 = arith.constant 1 : i32
    %0 = arith.muli %arg0, %c1_i32 : i32
    %1 = arith.addi %0, %arg1 : i32
    %c0_i32 = arith.constant 0 : i32
    %2 = arith.minsi %1, %c0_i32 : i32
    %c0_i32_0 = arith.constant 0 : i32
    %c0_i32_1 = arith.constant 0 : i32
    return %2, %c0_i32_0 : i32, i32
  }
  func.func @transform_2(%arg0: i32, %arg1: i32) -> (i32, i32) {
    %c0_i32 = arith.constant 0 : i32
    %c0_i32_0 = arith.constant 0 : i32
    return %arg0, %c0_i32 : i32, i32
  }
  func.func @transform_3(%arg0: i32, %arg1: i32) -> (i32, i32) {
    %c0_i32 = arith.constant 0 : i32
    %c0_i32_0 = arith.constant 0 : i32
    return %arg0, %c0_i32 : i32, i32
  }
}

</mosaic_0001>

<bundles_post_ra>
// kernel: tpu_custom_call.1
= control target key start
LH: loop header
LB: loop body
LE: loop exit
PB: predicated region body
PF: predicated region fallthrough
CT: control target
= control target key end

     0   :  { %9 = vsyncpa [#allocation3], 0  ;;  %s367_s0 = inlined_call_operand.hbm [shape: f32[16,128], index: 0, kind: input, shape index: {}]   ;;  %s368_s1 = inlined_call_operand.hbm [shape: f32[16,128], index: 1, kind: input, shape index: {}]   ;;  %s369_s2 = inlined_call_operand.hbm [shape: f32[8,128], index: 2, kind: output, shape index: {0}]   ;;  %s370_s3 = inlined_call_operand.hbm [shape: f32[8,128], index: 3, kind: output, shape index: {1}]  }
   0x1   :  { %10 = vsyncpa [#allocation6], 0 }
   0x2   :  { %11 = vsyncpa [#allocation4], 0 }
   0x3   :  { %12 = vsyncpa [#allocation9], 0  ;;  %s272_s12 = smov [#allocation2]   ;;  %s176_s16 = scalar_lea.hbm %s367_s0, 256 }
   0x4   :  { %s24_s13 = sshll.u32 %s272_s12, 4  ;;  %p177_p0 = scmp.ne.s32.totalorder %s367_s0, %s176_s16  ;;  %s25_s13 = int_to_ptr.vmem [resolvable:$true] %s24_s13 }
   0x5   :  { %p180_p1 = scmp.lt.u32.totalorder %s176_s16, %s367_s0 }
   0x7   :  { %p182_p2 = pnand %p180_p1, %p177_p0 }
   0x9   :  { %185 = shalt.err (!%p182_p2)
}
   0xa   :  { %s186_s21 = scalar_lea.vmem %s25_s13, 256  ;;  %p191_p4 = scmp.lt.s32.totalorder %s25_s13, %s25_s13 }
   0xb   :  { %p187_p3 = scmp.ne.s32.totalorder %s25_s13, %s186_s21  ;;  %p192_p5 = scmp.lt.s32.totalorder %s186_s21, %s186_s21 }
   0xd   :  { %p193_p6 = por %p192_p5, %p191_p4 }
   0xf   :  { %p194_p7 = pnand %p193_p6, %p187_p3 }
  0x11   :  { %197 = shalt.err (!%p194_p7)
}
  0x12   :  { %s273_s22 = smov 128   ;;  %s274_s23 = smov 8  }
  0x13   :  { %30 = dma.hbm_to_vmem [thread:$0]  %s367_s0, 256, %s25_s13, [#allocation3], %s273_s22, %s273_s22, %s274_s23  }
  0x14   :  { %s275_s26 = smov [#allocation5]   ;;  %s198_s30 = scalar_lea.hbm %s368_s1, 256 }
  0x15   :  { %s42_s27 = sshll.u32 %s275_s26, 4  ;;  %p199_p8 = scmp.ne.s32.totalorder %s368_s1, %s198_s30  ;;  %s43_s27 = int_to_ptr.vmem [resolvable:$true] %s42_s27 }
  0x16   :  { %p202_p9 = scmp.lt.u32.totalorder %s198_s30, %s368_s1 }
  0x18   :  { %p204_p10 = pnand %p202_p9, %p199_p8 }
  0x1a   :  { %207 = shalt.err (!%p204_p10)
}
  0x1b   :  { %s208_s8 = scalar_lea.vmem %s43_s27, 256  ;;  %p213_p12 = scmp.lt.s32.totalorder %s43_s27, %s43_s27 }
  0x1c   :  { %p209_p11 = scmp.ne.s32.totalorder %s43_s27, %s208_s8  ;;  %p214_p13 = scmp.lt.s32.totalorder %s208_s8, %s208_s8 }
  0x1e   :  { %p215_p0 = por %p214_p13, %p213_p12 }
  0x20   :  { %p216_p1 = pnand %p215_p0, %p209_p11 }
  0x22   :  { %219 = shalt.err (!%p216_p1)
}
  0x23   :  { %48 = dma.hbm_to_vmem [thread:$0]  %s368_s1, 256, %s43_s27, [#allocation6], %s273_s22, %s273_s22, %s274_s23  }
  0x24   :  { %264 = dma.done.wait [#allocation3], 256  }
  0x25   :  { %265 = vsyncadd [#allocation3], 4294967040 }
  0x26   :  { %266 = dma.done.wait [#allocation6], 256  }
  0x27   :  { %267 = vsyncadd [#allocation6], 4294967040  ;;  %v69_v0 = vld [vmem:[#allocation2] sm:$0xff]  ;;  %v70_v1 = vld [vmem:[#allocation2 + $0x8] sm:$0xff]  ;;  %v276_v6 = vmov 0.0   ;;  %s277_s1 = smov [#allocation8]  }
  0x28   :  { %v323_v2 = vld [vmem:[#allocation5] sm:$0xff]  ;;  %v325_v3 = vld [vmem:[#allocation5 + $0x8] sm:$0xff]  ;;  %v83_v4 = vand.u32 2147483647, %v69_v0  ;;  %v84_v5 = vand.u32 2147483647, %v70_v1 }
  0x29   :  { %vm73_vm0 = vcmp.ne.f32.partialorder %v323_v2, -1.0  ;;  %vm74_vm1 = vcmp.ne.f32.partialorder %v325_v3, -1.0  ;;  %s141_s10 = sshll.u32 %s277_s1, 4  ;;  %s142_s10 = int_to_ptr.vmem [resolvable:$true] %s141_s10 }
  0x2a   :  { %v159_v7 = vsel %vm73_vm0, 1.0, %v276_v6  ;;  %v85_v8 = vsub.f32 0.0, %v83_v4  ;;  %v160_v9 = vsel %vm74_vm1, 1.0, %v276_v6  ;;  %v86_v10 = vsub.f32 0.0, %v84_v5  ;;  %s220_s11 = scalar_lea.vmem %s142_s10, 128  ;;  %p225_p3 = scmp.lt.s32.totalorder %s142_s10, %s142_s10 }
  0x2b   :  { %v122_v11 = vadd.f32 %v160_v9, %v159_v7  ;;  %p221_p2 = scmp.ne.s32.totalorder %s142_s10, %s220_s11  ;;  %p226_p4 = scmp.lt.s32.totalorder %s220_s11, %s220_s11 }
  0x2c   :  { %v87_v12 = vmul.f32 1.442695, %v85_v8  ;;  %v89_v13 = vmul.f32 1.442695, %v86_v10 }
  0x2d   :  { %124 = vst [vmem:[#allocation8] sm:$0xff] %v122_v11  ;;  %p227_p5 = por %p226_p4, %p225_p3 }
  0x2e   :  { %168 = vpow2.f32 %v87_v12 }
  0x2f   :  { %170 = vpow2.f32 %v89_v13  ;;  %p228_p6 = pnand %p227_p5, %p221_p2 }
  0x31   :  { %231 = shalt.err (!%p228_p6)
}
  0x32   :  { %s232_s14 = scalar_lea.hbm %s370_s3, 128 }
  0x33   :  { %p233_p7 = scmp.ne.s32.totalorder %s370_s3, %s232_s14  ;;  %p236_p8 = scmp.lt.u32.totalorder %s232_s14, %s370_s3 }
  0x35   :  { %p238_p9 = pnand %p236_p8, %p233_p7 }
  0x37   :  { %241 = shalt.err (!%p238_p9)
}
  0x38   :  { %144 = dma.vmem_to_hbm [thread:$0]  %s142_s10, 128, %s370_s3, [#allocation9]   ;;  %v169_v14 = vpop.eup %168  ;;  %v75_v20 = vsel %vm73_vm0, %v323_v2, 0.0  ;;  %v76_v21 = vsel %vm74_vm1, %v325_v3, 0.0  ;;  %v77_v23 = vmax.f32 %v69_v0, 0.0  ;;  %v78_v27 = vmax.f32 %v70_v1, 0.0 }
  0x39   :  { %v171_v15 = vpop.eup %170  ;;  %v91_v16 = vadd.f32 1.0, %v169_v14  ;;  %v94_v18 = vmul.f32 -0.5, %v169_v14  ;;  %v79_v24 = vmul.f32 %v75_v20, %v69_v0  ;;  %v97_v25 = vand.u32 2147483647, %v169_v14  ;;  %s278_s3 = smov [#allocation7]  }
  0x3a   :  { %v100_v17 = vadd.f32 1.0, %v171_v15  ;;  %v103_v19 = vmul.f32 -0.5, %v171_v15  ;;  %v80_v28 = vmul.f32 %v76_v21, %v70_v1  ;;  %v106_v29 = vand.u32 2147483647, %v171_v15  ;;  %s131_s21 = sshll.u32 %s278_s3, 4  ;;  %s132_s21 = int_to_ptr.vmem [resolvable:$true] %s131_s21 }
  0x3b   :  { %172 = vlog2.f32 %v91_v16  ;;  %v95_v22 = vadd.f32 1.0, %v94_v18  ;;  %v81_v32 = vsub.f32 %v77_v23, %v79_v24  ;;  %vm98_vm2 = vcmp.lt.f32.partialorder %v97_v25, 0.0004427343  ;;  %s242_s22 = scalar_lea.vmem %s132_s21, 128  ;;  %p247_p11 = scmp.lt.s32.totalorder %s132_s21, %s132_s21 }
  0x3c   :  { %174 = vlog2.f32 %v100_v17  ;;  %v104_v26 = vadd.f32 1.0, %v103_v19  ;;  %v82_v35 = vsub.f32 %v78_v27, %v80_v28  ;;  %vm107_vm3 = vcmp.lt.f32.partialorder %v106_v29, 0.0004427343  ;;  %p243_p10 = scmp.ne.s32.totalorder %s132_s21, %s242_s22  ;;  %p248_p12 = scmp.lt.s32.totalorder %s242_s22, %s242_s22 }
  0x3d   :  { %v96_v30 = vmul.f32 %v169_v14, %v95_v22 }
  0x3e   :  { %v105_v33 = vmul.f32 %v171_v15, %v104_v26  ;;  %p249_p13 = por %p248_p12, %p247_p11 }
  0x40   :  { %p250_p0 = pnand %p249_p13, %p243_p10 }
  0x45   :  { %v173_v31 = vpop.eup %172 }
  0x46   :  { %v175_v34 = vpop.eup %174  ;;  %v93_v36 = vmul.f32 0.6931472, %v173_v31 }
  0x47   :  { %v102_v37 = vmul.f32 0.6931472, %v175_v34 }
  0x48   :  { %v99_v38 = vsel %vm98_vm2, %v96_v30, %v93_v36 }
  0x49   :  { %v108_v39 = vsel %vm107_vm3, %v105_v33, %v102_v37  ;;  %v109_v40 = vadd.f32 %v99_v38, %v81_v32 }
  0x4a   :  { %v110_v41 = vadd.f32 %v108_v39, %v82_v35 }
  0x4b   :  { %v111_v42 = vsel %vm73_vm0, %v109_v40, 0.0 }
  0x4c   :  { %v112_v43 = vsel %vm74_vm1, %v110_v41, 0.0 }
  0x4d   :  { %v114_v44 = vadd.f32 %v112_v43, %v111_v42 }
  0x4f   :  { %116 = vst [vmem:[#allocation7] sm:$0xff] %v114_v44 }
  0x50   :  { %253 = shalt.err (!%p250_p0)
}
  0x51   :  { %s254_s25 = scalar_lea.hbm %s369_s2, 128 }
  0x52   :  { %p255_p1 = scmp.ne.s32.totalorder %s369_s2, %s254_s25  ;;  %p258_p2 = scmp.lt.u32.totalorder %s254_s25, %s369_s2 }
  0x54   :  { %p260_p3 = pnand %p258_p2, %p255_p1 }
  0x56   :  { %263 = shalt.err (!%p260_p3)
}
  0x57   :  { %134 = dma.vmem_to_hbm [thread:$0]  %s132_s21, 128, %s369_s2, [#allocation4]  }
  0x58   :  { %268 = dma.done.wait [#allocation4], 128  }
  0x59   :  { %269 = vsyncadd [#allocation4], 4294967168 }
  0x5a   :  { %270 = dma.done.wait [#allocation9], 128  }
  0x5b   :  { %271 = vsyncadd [#allocation9], 4294967168 }
  0x5c   :  { %151 = vsyncpa [#allocation3], 1 }
  0x5d   :  { %152 = vsyncpa [#allocation6], 1 }
  0x5e   :  { %153 = vsyncpa [#allocation4], 1 }
  0x5f   :  { %154 = vsyncpa [#allocation9], 1 }

</bundles_post_ra>
